<compile_context>
chip_gen: v5e
topology: v5e:2x2
jax: 0.10.0
libtpu: 0.0.40
codegen_flags: <defaults>
</compile_context>

<pallas_src>
import jax
import jax.numpy as jnp
from jax.experimental import pallas as pl
from jax.experimental.pallas import tpu as pltpu


# ----------------------------------------------------------------------------
# Pallas kernel: fused (trend + season) DLinear head + denormalization
# ----------------------------------------------------------------------------
def _dlinear_kernel(feat_ref, w_ref, b_ref, stats_ref, out_ref):
    # feat_ref : (S_blk, B, F)   bf16, F = T*(1+E_trend) + T*(1+E_season)
    # w_ref    : (S_blk, F, P)   bf16  (trend & season head weights stacked on F)
    # b_ref    : (S_blk, 1, P)   f32   (trend bias + season bias, pre-added)
    # stats_ref: (S_blk, B, 2)   f32   ([..., 0] = std, [..., 1] = mean)
    # out_ref  : (B, S_blk * P)  f32   lane-dense output tile
    pred = jnp.einsum("sbf,sfp->sbp", feat_ref[...], w_ref[...],
                      preferred_element_type=jnp.float32)          # (S_blk,B,P)
    stats = stats_ref[...]
    pred = (pred + b_ref[...]) * stats[:, :, 0:1] + stats[:, :, 1:2]
    s_blk, _, p = pred.shape
    # Pack all S_blk series side by side so the HBM writeback is one dense tile.
    for s in range(s_blk):                       # static, unrolled; static slices
        out_ref[:, s * p:(s + 1) * p] = pred[s].astype(out_ref.dtype)


def dlinear_pallas(feat, w, b, stats, *, s_blk):
    """feat:(S,B,F) bf16, w:(S,F,P) bf16, b:(S,1,P) f32, stats:(S,B,2) f32
       -> (S, B, P) f32 de-normalized predictions."""
    S, B, F = feat.shape
    P = w.shape[-1]
    n_blk = pl.cdiv(S, s_blk)
    S_pad = n_blk * s_blk
    if S_pad != S:
        pad = [(0, S_pad - S), (0, 0), (0, 0)]
        feat = jnp.pad(feat, pad)
        w = jnp.pad(w, pad)
        b = jnp.pad(b, pad)
        stats = jnp.pad(stats, pad)

    # Double-buffered per-step VMEM estimate, with headroom; stays <= 64 MiB so
    # it is safe on v7x (64 MiB physical / 32 MiB scoped default) as well.
    blk_bytes = 2 * (s_blk * B * F * 2 + s_blk * F * P * 2 + s_blk * P * 4
                     + s_blk * B * 2 * 4 + B * s_blk * P * 4)
    vmem_limit = int(min(64 * 1024 * 1024, max(32 * 1024 * 1024, 4 * blk_bytes)))

    out = pl.pallas_call(
        _dlinear_kernel,
        out_shape=jax.ShapeDtypeStruct((n_blk, B, s_blk * P), jnp.float32),
        grid_spec=pltpu.PrefetchScalarGridSpec(
            num_scalar_prefetch=0,
            grid=(n_blk,),
            in_specs=[
                pl.BlockSpec((s_blk, B, F), lambda i: (i, 0, 0)),
                pl.BlockSpec((s_blk, F, P), lambda i: (i, 0, 0)),
                pl.BlockSpec((s_blk, 1, P), lambda i: (i, 0, 0)),
                pl.BlockSpec((s_blk, B, 2), lambda i: (i, 0, 0)),
            ],
            out_specs=pl.BlockSpec((None, B, s_blk * P), lambda i: (i, 0, 0)),
        ),
        compiler_params=pltpu.CompilerParams(
            dimension_semantics=("parallel",),
            vmem_limit_bytes=vmem_limit),
    )(feat, w, b, stats)

    # (n_blk, B, S_blk*P) -> (S, B, P)
    out = out.reshape(n_blk, B, s_blk, P)
    out = jnp.transpose(out, (0, 2, 1, 3)).reshape(S_pad, B, P)
    return out[:S]


# ----------------------------------------------------------------------------
# JAX glue (cheap elementwise pieces of the module, kept series-major)
# ----------------------------------------------------------------------------
def _time2vec_series_major(ticks_bt, w, b):
    """ticks_bt:(B,T)  w,b:(S,E)  ->  (S,B,T,E); channel 0 linear, rest sin."""
    z = ticks_bt[None, :, :, None] * w[:, None, None, :] + b[:, None, None, :]
    return jnp.concatenate([z[..., :1], jnp.sin(z[..., 1:])], axis=-1)


def _moving_average_last(x, kernel_size):
    """x:(..., T); replicate-pad along last axis, cumsum-based sliding mean."""
    assert kernel_size % 2 == 1, "moving_avg kernel must be odd (DLinear default)"
    pad = (kernel_size - 1) // 2
    front = jnp.repeat(x[..., :1], pad, axis=-1)
    back = jnp.repeat(x[..., -1:], pad, axis=-1)
    xp = jnp.concatenate([front, x, back], axis=-1)              # (..., T+k-1)
    csum = jnp.cumsum(xp, axis=-1)
    csum = jnp.concatenate([jnp.zeros_like(csum[..., :1]), csum], axis=-1)
    return (csum[..., kernel_size:] - csum[..., :-kernel_size]) / kernel_size


def time2vec_dlinear_forward(params, time_series, time_ticks, *,
                             num_pred_steps, moving_avg_kernel=5, eps=1e-5,
                             s_blk=None):
    """time_series:(B,T,S), time_ticks:(B,T,1) -> (B,P,S) (or (B,S) if P==1)."""
    B, T, S = time_series.shape
    P = num_pred_steps

    # Go series-major up front: the large feature tensors are then built in the
    # exact layout the kernel consumes (no XLA-side relayout of the big slabs).
    x = jnp.transpose(time_series, (2, 0, 1))                    # (S,B,T)

    # Normalizer.normalize
    # TODO(synk): layer.Normalizer source not provided; population std (ddof=0)
    # with eps added to std is assumed (torch.std default would be ddof=1).
    mean = jnp.mean(x, axis=-1, keepdims=True)                   # (S,B,1)
    std = jnp.std(x, axis=-1, keepdims=True) + eps               # (S,B,1)
    normed = (x - mean) / std

    # DLinear series decomposition.
    trend_comp = _moving_average_last(normed, moving_avg_kernel)  # (S,B,T)
    season_comp = normed - trend_comp

    # Time2Vec embeddings, built directly series-major.
    ticks_bt = time_ticks[..., 0]                                 # (B,T)
    trend_emb = _time2vec_series_major(ticks_bt, params["w_trend_t2v"],
                                       params["b_trend_t2v"])
    season_emb = _time2vec_series_major(ticks_bt, params["w_season_t2v"],
                                        params["b_season_t2v"])

    # Flatten [component | embedding] per series and fuse trend/season features
    # along F so the kernel runs a single matmul per series block.
    def flat_feat(comp, emb):
        f = jnp.concatenate([comp[..., None], emb], axis=-1)      # (S,B,T,1+E)
        return f.reshape(S, B, T * (1 + emb.shape[-1]))

    feat = jnp.concatenate([flat_feat(trend_comp, trend_emb),
                            flat_feat(season_comp, season_emb)],
                           axis=-1).astype(jnp.bfloat16)          # (S,B,Ft+Fs)
    w = jnp.concatenate([params["w_trend_lin"], params["w_season_lin"]],
                        axis=1).astype(jnp.bfloat16)              # (S,Ft+Fs,P)
    bias = (params["b_trend_lin"] + params["b_season_lin"]).astype(jnp.float32)
    stats = jnp.concatenate([std, mean], axis=-1).astype(jnp.float32)  # (S,B,2)

    if s_blk is None:
        # >=2 grid steps when possible (both v7x TensorCores get work), modest
        # block size so double-buffered tiles comfortably fit scoped VMEM.
        s_blk = max(1, min(16, pl.cdiv(S, 2)))

    out_sbp = dlinear_pallas(feat, w, bias, stats, s_blk=s_blk)   # (S,B,P)

    pred = jnp.transpose(out_sbp, (1, 2, 0))                      # (B,P,S)
    if P == 1:
        pred = jnp.squeeze(pred, axis=1)                          # (B,S)
    return pred


def init_params(key, *, num_series, num_steps, num_pred_steps,
                trend_embed_dim, season_embed_dim):
    ks = jax.random.split(key, 8)
    Ft = num_steps * (1 + trend_embed_dim)
    Fs = num_steps * (1 + season_embed_dim)
    return {
        # Time2Vec params (per-series, keep_dim_series=True)
        "w_trend_t2v": jax.random.normal(ks[0], (num_series, trend_embed_dim), jnp.float32) * 0.1,
        "b_trend_t2v": jax.random.normal(ks[1], (num_series, trend_embed_dim), jnp.float32) * 0.1,
        "w_season_t2v": jax.random.normal(ks[2], (num_series, season_embed_dim), jnp.float32) * 0.1,
        "b_season_t2v": jax.random.normal(ks[3], (num_series, season_embed_dim), jnp.float32) * 0.1,
        # DLinear individual (per-series) heads
        "w_trend_lin": jax.random.normal(ks[4], (num_series, Ft, num_pred_steps), jnp.float32) * 0.05,
        "b_trend_lin": jnp.zeros((num_series, 1, num_pred_steps), jnp.float32),
        "w_season_lin": jax.random.normal(ks[5], (num_series, Fs, num_pred_steps), jnp.float32) * 0.05,
        "b_season_lin": jnp.zeros((num_series, 1, num_pred_steps), jnp.float32),
    }


if __name__ == "__main__":
    B, T, S = 2, 8, 4
    P = 4
    E_TREND, E_SEASON = 4, 6

    key = jax.random.PRNGKey(0)
    k_param, k_series, k_ticks = jax.random.split(key, 3)

    params = init_params(k_param, num_series=S, num_steps=T, num_pred_steps=P,
                         trend_embed_dim=E_TREND, season_embed_dim=E_SEASON)

    time_series = jax.random.normal(k_series, (B, T, S), jnp.float32)
    time_ticks = jnp.arange(T, dtype=jnp.float32).reshape(1, T, 1)
    time_ticks = jnp.tile(time_ticks, (B, 1, 1))                  # (B,T,1)

    # TODO(synk): `layer.Normalizer/Time2Vec/DLinear` sources were not provided;
    # their standard published semantics (documented above) were used.
    fwd = jax.jit(lambda ts, tt: time2vec_dlinear_forward(
        params, ts, tt, num_pred_steps=P, moving_avg_kernel=5))
    pred = fwd(time_series, time_ticks)
    jax.block_until_ready(pred)
    assert pred.shape == (B, P, S), pred.shape
    print("KERNEL_OK")
</pallas_src>

<mosaic_0001>
module attributes {stable_mosaic.version = 11 : i64} {
  func.func @_dlinear_kernel(%arg0: i32, %arg1: memref<2x2x96xbf16, #tpu.memory_space<vmem>>, %arg2: memref<2x96x4xbf16, #tpu.memory_space<vmem>>, %arg3: memref<2x1x4xf32, #tpu.memory_space<vmem>>, %arg4: memref<2x2x2xf32, #tpu.memory_space<vmem>>, %arg5: memref<1x2x8xf32, #tpu.memory_space<vmem>>) attributes {dimension_semantics = [#tpu.dimension_semantics<parallel>], iteration_bounds = array<i64: 2>, scalar_prefetch = 0 : i64, scratch_operands = 0 : i64, tpu.core_type = #tpu.core_type<tc>, window_params = [{transform_indices = @transform_0, window_bounds = array<i64: 2, 2, 96>}, {transform_indices = @transform_1, window_bounds = array<i64: 2, 96, 4>}, {transform_indices = @transform_2, window_bounds = array<i64: 2, 1, 4>}, {transform_indices = @transform_3, window_bounds = array<i64: 2, 2, 2>}, {transform_indices = @transform_4, window_bounds = array<i64: 1, 2, 8>}]} {
    %c0 = arith.constant 0 : index
    %c0_0 = arith.constant 0 : index
    %c0_1 = arith.constant 0 : index
    %0 = vector.load %arg1[%c0, %c0_0, %c0_1] : memref<2x2x96xbf16, #tpu.memory_space<vmem>>, vector<2x2x96xbf16>
    %c0_2 = arith.constant 0 : index
    %c0_3 = arith.constant 0 : index
    %c0_4 = arith.constant 0 : index
    %1 = vector.load %arg2[%c0_2, %c0_3, %c0_4] : memref<2x96x4xbf16, #tpu.memory_space<vmem>>, vector<2x96x4xbf16>
    "tpu.trace_start"() <{level = 10 : i32, message = "sbf,sfp->sbp"}> : () -> ()
    %cst = arith.constant dense<0.000000e+00> : vector<2x2x4xf32>
    %2 = tpu.matmul %0, %1, %cst {dimension_numbers = #tpu.dot_dimension_numbers<[2], [1], [1], [2], [0, 0, 0, 1, 1, 2], [0], [0]>} : vector<2x2x96xbf16>, vector<2x96x4xbf16>, vector<2x2x4xf32> -> vector<2x2x4xf32>
    "tpu.trace_stop"() : () -> ()
    %c0_5 = arith.constant 0 : index
    %c0_6 = arith.constant 0 : index
    %c0_7 = arith.constant 0 : index
    %3 = vector.load %arg4[%c0_5, %c0_6, %c0_7] : memref<2x2x2xf32, #tpu.memory_space<vmem>>, vector<2x2x2xf32>
    %c0_8 = arith.constant 0 : index
    %c0_9 = arith.constant 0 : index
    %c0_10 = arith.constant 0 : index
    %4 = vector.load %arg3[%c0_8, %c0_9, %c0_10] : memref<2x1x4xf32, #tpu.memory_space<vmem>>, vector<2x1x4xf32>
    %5 = vector.broadcast %4 : vector<2x1x4xf32> to vector<2x2x4xf32>
    %6 = arith.addf %2, %5 : vector<2x2x4xf32>
    %7 = vector.extract_strided_slice %3 {offsets = [0, 0, 0], sizes = [2, 2, 1], strides = [1, 1, 1]} : vector<2x2x2xf32> to vector<2x2x1xf32>
    %8 = vector.broadcast %7 : vector<2x2x1xf32> to vector<2x2x4xf32>
    %9 = arith.mulf %6, %8 : vector<2x2x4xf32>
    %10 = vector.extract_strided_slice %3 {offsets = [0, 0, 1], sizes = [2, 2, 1], strides = [1, 1, 1]} : vector<2x2x2xf32> to vector<2x2x1xf32>
    %11 = vector.broadcast %10 : vector<2x2x1xf32> to vector<2x2x4xf32>
    %12 = arith.addf %9, %11 : vector<2x2x4xf32>
    %13 = vector.extract_strided_slice %12 {offsets = [0, 0, 0], sizes = [1, 2, 4], strides = [1, 1, 1]} : vector<2x2x4xf32> to vector<1x2x4xf32>
    %14 = vector.shape_cast %13 : vector<1x2x4xf32> to vector<2x4xf32>
    %c0_11 = arith.constant 0 : index
    %c0_12 = arith.constant 0 : index
    %c0_13 = arith.constant 0 : index
    %15 = vector.load %arg5[%c0_11, %c0_12, %c0_13] : memref<1x2x8xf32, #tpu.memory_space<vmem>>, vector<1x2x4xf32>
    %16 = vector.shape_cast %15 : vector<1x2x4xf32> to vector<2x4xf32>
    %17 = vector.shape_cast %14 : vector<2x4xf32> to vector<1x2x4xf32>
    tpu.vector_store %arg5[%c0_11, %c0_12, %c0_13], %17 {strides = array<i32>} : memref<1x2x8xf32, #tpu.memory_space<vmem>>, vector<1x2x4xf32>,
    %18 = vector.extract_strided_slice %12 {offsets = [1, 0, 0], sizes = [1, 2, 4], strides = [1, 1, 1]} : vector<2x2x4xf32> to vector<1x2x4xf32>
    %19 = vector.shape_cast %18 : vector<1x2x4xf32> to vector<2x4xf32>
    %c0_14 = arith.constant 0 : index
    %c0_15 = arith.constant 0 : index
    %c4 = arith.constant 4 : index
    %20 = vector.load %arg5[%c0_14, %c0_15, %c4] : memref<1x2x8xf32, #tpu.memory_space<vmem>>, vector<1x2x4xf32>
    %21 = vector.shape_cast %20 : vector<1x2x4xf32> to vector<2x4xf32>
    %22 = vector.shape_cast %19 : vector<2x4xf32> to vector<1x2x4xf32>
    tpu.vector_store %arg5[%c0_14, %c0_15, %c4], %22 {strides = array<i32>} : memref<1x2x8xf32, #tpu.memory_space<vmem>>, vector<1x2x4xf32>,
    return
  }
  func.func @transform_0(%arg0: i32) -> (i32, i32, i32) {
    %c0_i32 = arith.constant 0 : i32
    %c0_i32_0 = arith.constant 0 : i32
    %c0_i32_1 = arith.constant 0 : i32
    return %arg0, %c0_i32, %c0_i32_0 : i32, i32, i32
  }
  func.func @transform_1(%arg0: i32) -> (i32, i32, i32) {
    %c0_i32 = arith.constant 0 : i32
    %c0_i32_0 = arith.constant 0 : i32
    %c0_i32_1 = arith.constant 0 : i32
    return %arg0, %c0_i32, %c0_i32_0 : i32, i32, i32
  }
  func.func @transform_2(%arg0: i32) -> (i32, i32, i32) {
    %c0_i32 = arith.constant 0 : i32
    %c0_i32_0 = arith.constant 0 : i32
    %c0_i32_1 = arith.constant 0 : i32
    return %arg0, %c0_i32, %c0_i32_0 : i32, i32, i32
  }
  func.func @transform_3(%arg0: i32) -> (i32, i32, i32) {
    %c0_i32 = arith.constant 0 : i32
    %c0_i32_0 = arith.constant 0 : i32
    %c0_i32_1 = arith.constant 0 : i32
    return %arg0, %c0_i32, %c0_i32_0 : i32, i32, i32
  }
  func.func @transform_4(%arg0: i32) -> (i32, i32, i32) {
    %c0_i32 = arith.constant 0 : i32
    %c0_i32_0 = arith.constant 0 : i32
    %c0_i32_1 = arith.constant 0 : i32
    return %arg0, %c0_i32, %c0_i32_0 : i32, i32, i32
  }
}

</mosaic_0001>

<bundles_post_ra>
// kernel: _lambda_.1
= control target key start
LH: loop header
LB: loop body
LE: loop exit
PB: predicated region body
PF: predicated region fallthrough
CT: control target
= control target key end

     0   :  { %s646_s15 = smov 0   ;;  %s701_s0 = inlined_call_operand.vmem [shape: bf16[4,2,96], index: 0, kind: input, shape index: {}]   ;;  %s702_s1 = inlined_call_operand.vmem [shape: bf16[4,96,4], index: 1, kind: input, shape index: {}]   ;;  %s703_s2 = inlined_call_operand.vmem [shape: f32[4,1,4], index: 2, kind: input, shape index: {}]   ;;  %s704_s3 = inlined_call_operand.vmem [shape: f32[4,2,2], index: 3, kind: input, shape index: {}]   ;;  %s705_s4 = inlined_call_operand.vmem [shape: f32[2,2,8], index: 4, kind: output, shape index: {}]  }
   0x1 LB: > { %s652_s16 = sadd.s32 4294967295, %s616_s15   ;;  %p520_p0 = scmp.ge.s32.totalorder %s616_s15, 1  ;;  %s616_s15 = sphi %s646_s15, %s14_s15  }
   0x2   : > { %p195_p1 = scmp.lt.s32.totalorder %s616_s15, 3 }
   0x4   : > { %p196_p2 = pnand %p520_p0, %p195_p1 }
   0x5   : > { %s521_s17 = sshll.u32 (!%p196_p2), %s652_s16, 1  ;;  %p257_p4 = scmp.lt.s32.totalorder (!%p196_p2), %s652_s16, 1 }
   0x6   : > { %199 = sbr.rel (%p196_p2) target bundleno = 263 (0x107), region = 36  ;;  %p235_p3 = scmp.lt.s32.totalorder (!%p196_p2), %s521_s17, 3 }
   0x7   : > { %s620_s10 = smov (!%p196_p2), 4  }
   0xb   : > { %v618_v0 = vmov 0   ;;  %s707_s17 = smov (!%p235_p3, %s521_s17), 3  ;;  %v619_v10 = vmov 1   ;;  %vm334_vm0 = vcmask 785408   ;;  %s709_s16 = smov (!%p257_p4, %s652_s16), 1  ;;  %vm425_vm1 = vcmask 25600  }
   0xc   : > { %604 = vset.pattern.permute.xlu0 %v618_v0  ;;  %606 = vset.pattern.permute.xlu1 %v618_v0  ;;  %s592_s18 = smul.u32 48, %s707_s17  ;;  %s526_s19 = sshll.u32 %s707_s17, 1  ;;  %vm431_vm2 = vcmask 58400  }
   0xd   : > { %s665_s22 = scalar_lea.vmem %s703_s2, %s707_s17  ;;  %s255_s28 = scalar_lea.vmem %s704_s3, %s526_s19 }
   0xe   : > { %s670_s25 = scalar_lea.vmem %s702_s1, %s592_s18  ;;  %v289_v3 = vld [vmem:[%s255_s28 + $0x2] sm:$0x3]  ;;  %v288_v6 = vld [vmem:[%s255_s28] sm:$0x3]  ;;  %s237_s5 = scalar_lea.vmem %s701_s0, %s707_s17 }
   0xf   : > { %v591_v1 = vld [vmem:[%s670_s25 + $0x58] sm:$0xff]  ;;  %v590_v2 = vld [vmem:[%s670_s25 + $0x50] sm:$0xff]  ;;  %v585_v4 = vld [vmem:[%s670_s25 + $0x28] sm:$0xff]  ;;  %410 = vperm.xlu0 %604, %v289_v3   ;;  %405 = vperm.xlu1 %606, %v288_v6   ;;  %s527_s6 = sshll.u32 %s709_s16, 1 }
  0x10   : > { %392 = vmatpush.bf16.msra.mxu1 %v591_v1  ;;  %340 = vmatpush.bf16.msra.mxu0 %v585_v4  ;;  %v584_v5 = vld [vmem:[%s670_s25 + $0x20] sm:$0xff]  ;;  %v589_v7 = vld [vmem:[%s670_s25 + $0x48] sm:$0xff]  ;;  %v583_v8 = vld [vmem:[%s670_s25 + $0x18] sm:$0xff]  ;;  %s260_s9 = scalar_lea.vmem %s705_s4, %s527_s6 }
  0x11   : > { %v588_v9 = vld [vmem:[%s670_s25 + $0x40] sm:$0xff]  ;;  %v582_v11 = vld [vmem:[%s670_s25 + $0x10] sm:$0xff]  ;;  %v587_v12 = vld [vmem:[%s670_s25 + $0x38] sm:$0xff] }
  0x12   : > { %v581_v13 = vld [vmem:[%s670_s25 + $0x8] sm:$0xff]  ;;  %v586_v14 = vld [vmem:[%s670_s25 + $0x30] sm:$0xff]  ;;  %v580_v15 = vld [vmem:[%s670_s25] sm:$0xff] }
  0x13   : > { %v263_v16 = vld [vmem:[%s237_s5 + $0x1] sm:$0x1]  ;;  %v262_v17 = vld [vmem:[%s237_s5] sm:$0x1] }
  0x14   : > { %393 = vmatpush.bf16.msra.mxu1 %v590_v2  ;;  %341 = vmatpush.bf16.msra.mxu0 %v584_v5  ;;  %v608_v20 = vld [vmem:[%s665_s22 + $0x1] ss:$0 sm:$0xff]  ;;  %v609_v21 = vld [vmem:[%s665_s22] ss:$0 sm:$0xff] }
  0x17   : > { %605 = vset.pattern.permute.xlu0 %v619_v10  ;;  %607 = vset.pattern.permute.xlu1 %v619_v10 }
  0x18   : > { %394 = vmatpush.bf16.msra.mxu1 %v589_v7  ;;  %420 = vperm.xlu0 %605, %v289_v3  }
  0x19   : > { %342 = vmatpush.bf16.msra.mxu0 %v583_v8  ;;  %416 = vperm.xlu1 %607, %v288_v6  }
  0x1c   : > { %395 = vmatpush.bf16.msra.mxu1 %v588_v9 }
  0x1d   : > { %343 = vmatpush.bf16.msra.mxu0 %v582_v11 }
  0x20   : > { %396 = vmatpush.bf16.msra.mxu1 %v587_v12 }
  0x21   : > { %344 = vmatpush.bf16.msra.mxu0 %v581_v13 }
  0x24   : > { %397 = vmatpush.bf16.msra.mxu1 %v586_v14 }
  0x25   : > { %345 = vmatpush.bf16.msra.mxu0 %v580_v15 }
  0x27   : > { %577 = vmatmul.msk.bf16.vlgmr.msra.gmra.mxu1 %vm334_vm0, %v263_v16 }
  0x28   : > { %552 = vmatmul.msk.bf16.vlgmr.msra.gmra.mxu0 %vm334_vm0, %v262_v17 }
  0x81   : > { %v411_v18 = vpop.permute.xlu0 %410  ;;  %v406_v19 = vpop.permute.xlu1 %405 }
  0x8a   : > { %v421_v24 = vpop.permute.xlu0 %420 }
  0x8b   : > { %v417_v28 = vpop.permute.xlu1 %416 }
  0xa4   : > { %v399_v22 = vpop.f32.mrf.mxu1 }
  0xa5   : > { %v400_v23 = vadd.f32 %v608_v20, %v399_v22  ;;  %v347_v25 = vpop.f32.mrf.mxu0 }
  0xa6   : > { %v348_v27 = vadd.f32 %v609_v21, %v347_v25 }
  0xa7   : > { %v414_v26 = vmul.f32 %v411_v18, %v400_v23 }
  0xa8   : > { %v413_v30 = vmul.f32 %v406_v19, %v348_v27 }
  0xa9   : > { %v424_v29 = vadd.f32 %v421_v24, %v414_v26 }
  0xaa   : > { %v423_v31 = vadd.f32 %v417_v28, %v413_v30 }
  0xab   : > { %428 = vrot.lane.b32.xlu2 %v424_v29, %s620_s10 }
  0xac   : > { %v401_v32 = vpop.f32.mrf.mxu1  ;;  %426 = vst.msk [vmem:[%s260_s9] sm:$0x3] %vm425_vm1, %v423_v31 }
  0xad   : > { %v349_v33 = vpop.f32.mrf.mxu0 }
 0x105   : > { %v429_v34 = vpop.permute.xlu2 %428 }
 0x106   : > { %432 = vst.msk [vmem:[%s260_s9] sm:$0x3] %vm431_vm2, %v429_v34 }
 0x107 PF: > { %s14_s15 = sadd.s32 1, %s616_s15  }
 0x108   : > { %p11_p5 = scmp.ge.s32.totalorder %s14_s15, 4  }
 0x10a   :  { %13 = sbr.rel (!%p11_p5) target bundleno = 1 (0x1), region = 75 }

</bundles_post_ra>
